<compile_context>
chip_gen: v6e
topology: v6e:2x2x1
jax: 0.10.0
libtpu: 0.0.40
codegen_flags: <defaults>
</compile_context>

<pallas_src>
import functools

import jax
import jax.numpy as jnp
from jax.experimental import pallas as pl
from jax.experimental.pallas import tpu as pltpu

LANE = 128
SUBLANE = 8


def _round_up(x, m):
    return ((x + m - 1) // m) * m


def _largest_divisor_tile(n, cap, align):
    """Largest multiple of `align` that divides n and is <= cap (falls back to `align`)."""
    cap = min(cap, n)
    best = align
    for t in range(align, cap + 1, align):
        if n % t == 0:
            best = t
    return best


def _pick_row_tile(n_pad, cap=512):
    # Prefer >=2 row tiles so the 'parallel' axis can be sharded across both v7x
    # TensorCores; tile must be a multiple of 8 (sublane) and divide n_pad.
    cap = min(cap, max(n_pad // 2, SUBLANE))
    return _largest_divisor_tile(n_pad, cap, SUBLANE)


def _pick_red_tile(n_pad, cap=2048):
    # Big reduction tiles keep the per-step A-tile DMA well above the ~0.35us fixed
    # grid-step overhead (the kernel is HBM-bound on streaming A_hat).
    return _largest_divisor_tile(n_pad, cap, LANE)


# ----------------------------- Pallas kernel -------------------------------

def gcn_agg_kernel(a_ref, xw_ref, b_ref, o_ref, acc_ref, *, tk, x_resident, apply_relu):
    """out_tile = (sum_k A[i,k] @ XW[k]) + b, optional ReLU.

    Grid: (row tiles of A_hat [parallel], reduction tiles over neighbors [arbitrary]).
      a_ref  : [tm, tk]             bf16 tile of the normalized adjacency (HBM stream)
      xw_ref : [n_pad, F_pad] bf16  (VMEM-resident)  or  [tk, F_pad] (streamed)
      b_ref  : [1, F_pad]  f32 bias (resident)
      o_ref  : [tm, F_pad] output tile (written once, at the last reduction step)
      acc_ref: [tm, F_pad] f32 VMEM accumulator
    """
    k = pl.program_id(1)

    @pl.when(k == 0)
    def _():
        acc_ref[...] = jnp.zeros_like(acc_ref)

    if x_resident:
        off = pl.multiple_of(k * tk, tk)
        xw_blk = xw_ref[pl.ds(off, tk), :]
    else:
        xw_blk = xw_ref[...]

    acc_ref[...] += jnp.dot(a_ref[...], xw_blk, preferred_element_type=jnp.float32)

    @pl.when(k == pl.num_programs(1) - 1)
    def _():
        h = acc_ref[...] + b_ref[...]
        if apply_relu:
            h = jnp.maximum(h, 0.0)
        o_ref[...] = h.astype(o_ref.dtype)


def gcn_aggregate(a_p, xw_p, b_p, *, apply_relu, out_dtype):
    """Tiled, pipelined A_hat @ XW + b (+ReLU) on padded (lane-dense) operands."""
    n_pad = a_p.shape[0]
    f_pad = xw_p.shape[1]

    tm = _pick_row_tile(n_pad)
    tk = _pick_red_tile(n_pad)
    grid = (n_pad // tm, n_pad // tk)

    # Keep XW fully VMEM-resident when small enough (avoids re-streaming it once per
    # row tile); otherwise stream a (tk, f_pad) block per reduction step.
    x_resident = n_pad * f_pad * 2 <= 8 * 1024 * 1024
    if x_resident:
        xw_spec = pl.BlockSpec((n_pad, f_pad), lambda i, k: (0, 0))
    else:
        xw_spec = pl.BlockSpec((tk, f_pad), lambda i, k: (k, 0))

    kernel = functools.partial(
        gcn_agg_kernel, tk=tk, x_resident=x_resident, apply_relu=apply_relu)

    return pl.pallas_call(
        kernel,
        out_shape=jax.ShapeDtypeStruct((n_pad, f_pad), out_dtype),
        grid_spec=pltpu.PrefetchScalarGridSpec(
            num_scalar_prefetch=0,
            grid=grid,
            in_specs=[
                pl.BlockSpec((tm, tk), lambda i, k: (i, k)),    # A_hat tile (the big stream)
                xw_spec,                                        # XW (resident or streamed)
                pl.BlockSpec((1, f_pad), lambda i, k: (0, 0)),  # bias (resident)
            ],
            out_specs=pl.BlockSpec((tm, f_pad), lambda i, k: (i, 0)),
            scratch_shapes=[pltpu.VMEM((tm, f_pad), jnp.float32)],
        ),
        compiler_params=pltpu.CompilerParams(
            dimension_semantics=("parallel", "arbitrary"),
            vmem_limit_bytes=48 * 1024 * 1024,  # below v7x's 64 MiB physical VMEM
        ),
    )(a_p, xw_p, b_p)


# ------------------------------- Glue / wrapper -----------------------------

def build_norm_adj_padded(edge_index, edge_weight, num_nodes, n_pad):
    """Padded bf16 D^{-1/2}(A+I)D^{-1/2} built with O(E) degree/normalization math and a
    single scatter into the padded buffer (one pass over N^2 instead of 4-5)."""
    src = edge_index[0].astype(jnp.int32)
    dst = edge_index[1].astype(jnp.int32)
    w = edge_weight.astype(jnp.float32)

    # Degree of (A + I): incoming edge weight per target node + self-loop weight 1.
    deg = jnp.zeros((num_nodes,), jnp.float32).at[dst].add(w) + 1.0
    d_inv_sqrt = jax.lax.rsqrt(deg)  # deg >= 1, no zero guard needed

    vals = d_inv_sqrt[dst] * w * d_inv_sqrt[src]
    a_p = jnp.zeros((n_pad, n_pad), jnp.float32)
    a_p = a_p.at[dst, src].add(vals)
    diag = jnp.arange(num_nodes, dtype=jnp.int32)
    a_p = a_p.at[diag, diag].add(1.0 / deg)  # normalized self loops: d_i * 1 * d_i
    # TODO(synk): PyG's gcn_norm only adds *missing* self loops; graphs that already
    # contain self loops will differ slightly from this (A + I) convention.
    return a_p.astype(jnp.bfloat16)


class GCNEncoderPallas:
    def __init__(self, num_node_types, emb_dim, hidden_dim, out_dim, key):
        k_emb, k_w1, k_w2 = jax.random.split(key, 3)
        self.emb_dim = emb_dim
        self.hidden_dim = hidden_dim
        self.out_dim = out_dim
        self.h_pad = _round_up(hidden_dim, LANE)
        self.o_pad = _round_up(out_dim, LANE)

        self.emb = jax.random.normal(k_emb, (num_node_types, emb_dim), jnp.float32)

        # GCNConv linear weights (Glorot-like init); biases zero (matches PyG GCNConv init).
        s1 = (6.0 / (emb_dim + hidden_dim)) ** 0.5
        s2 = (6.0 / (hidden_dim + out_dim)) ** 0.5
        w1 = jax.random.uniform(k_w1, (emb_dim, hidden_dim), jnp.float32, -s1, s1)
        w2 = jax.random.uniform(k_w2, (hidden_dim, out_dim), jnp.float32, -s2, s2)

        # Pad feature dims to lane width once (padded rows/cols stay exactly zero, which is
        # safe through matmul, zero bias and ReLU). Kept f32: projections run in plain JAX.
        self.w1_p = (jnp.zeros((emb_dim, self.h_pad), jnp.float32)
                     .at[:, :hidden_dim].set(w1))
        self.w2_p = (jnp.zeros((self.h_pad, self.o_pad), jnp.float32)
                     .at[:hidden_dim, :out_dim].set(w2))
        self.b1_p = jnp.zeros((1, self.h_pad), jnp.float32)
        self.b2_p = jnp.zeros((1, self.o_pad), jnp.float32)

        # Jit the full forward so the glue (gather, scatter, tiny matmuls) is fused by XLA
        # and, for a static graph, the adjacency build is CSE'd within one call.
        self._fwd = jax.jit(self._forward)

    def _forward(self, x_node_types, edge_index, edge_weight):
        n = x_node_types.shape[0]
        n_pad = _round_up(n, LANE)

        # Glue in plain JAX: embedding gather, O(E) adjacency normalization + scatter,
        # tiny dense projections X @ W in f32.
        # TODO(synk): for large/sparse graphs keep A in CSR form in HBM (memory_space=pl.ANY)
        # and gather neighbor rows with scalar-prefetched row pointers instead of densifying.
        a_p = build_norm_adj_padded(edge_index, edge_weight, n, n_pad)  # [n_pad, n_pad] bf16

        x = jnp.take(self.emb, x_node_types, axis=0)                    # [n, emb_dim] f32
        xw1 = jnp.dot(x, self.w1_p)                                     # [n, h_pad] f32
        xw1_p = (jnp.zeros((n_pad, self.h_pad), jnp.bfloat16)
                 .at[:n, :].set(xw1.astype(jnp.bfloat16)))

        # Layer 1: A_hat @ (X W1) + b1, ReLU (fused Pallas kernel).
        h_p = gcn_aggregate(a_p, xw1_p, self.b1_p,
                            apply_relu=True, out_dtype=jnp.bfloat16)    # [n_pad, h_pad]

        # Dropout(p=0.5): identity in eval/inference mode.
        # TODO(synk): training-mode dropout would use pltpu.prng_seed / prng_random_bits.

        # Layer 2: A_hat @ (H W2) + b2 (fused Pallas kernel).
        hw2_p = jnp.dot(h_p.astype(jnp.float32), self.w2_p).astype(jnp.bfloat16)
        out_p = gcn_aggregate(a_p, hw2_p, self.b2_p,
                              apply_relu=False, out_dtype=jnp.float32)  # [n_pad, o_pad]

        return out_p[:n, :self.out_dim]

    def __call__(self, x_node_types, edge_index, edge_weight=None):
        if edge_weight is None:
            edge_weight = jnp.ones((edge_index.shape[1],), jnp.float32)
        return self._fwd(x_node_types, edge_index, edge_weight)


# ----------------------------------- Main -----------------------------------

if __name__ == "__main__":
    key = jax.random.PRNGKey(0)
    k_params, k_types = jax.random.split(key)

    num_node_types = 10
    emb_dim = 16
    hidden_dim = 32
    out_dim = 16
    num_nodes = 16

    model = GCNEncoderPallas(num_node_types, emb_dim, hidden_dim, out_dim, k_params)

    # Deterministic small graph: node type ids + a ring graph (undirected edges).
    x_node_types = jax.random.randint(k_types, (num_nodes,), 0, num_node_types)
    src = jnp.arange(num_nodes, dtype=jnp.int32)
    dst = (src + 1) % num_nodes
    edge_index = jnp.stack(
        [jnp.concatenate([src, dst]), jnp.concatenate([dst, src])], axis=0
    )  # [2, 2*num_nodes]
    edge_weight = None  # defaults to ones

    out = model(x_node_types, edge_index, edge_weight)
    jax.block_until_ready(out)
    assert out.shape == (num_nodes, out_dim)
    print("KERNEL_OK")
</pallas_src>

<mosaic_0001>
module attributes {stable_mosaic.version = 11 : i64} {
  func.func private @main(%arg0: i32) attributes {dimension_semantics = [#tpu.dimension_semantics<core_parallel>], iteration_bounds = array<i64: 2>, tpu.core_type = #tpu.core_type<sc_scalar_subcore>, window_params = []} {
    return
  }
}

module attributes {stable_mosaic.version = 11 : i64} {
  func.func private @main(%arg0: i32) attributes {dimension_semantics = [#tpu.dimension_semantics<core_parallel>], iteration_bounds = array<i64: 2>, tpu.core_type = #tpu.core_type<sc_scalar_subcore>, window_params = []} {
    return
  }
}

module attributes {stable_mosaic.version = 11 : i64} {
  func.func @gcn_agg_kernel(%arg0: i32, %arg1: i32, %arg2: memref<64x128xbf16, #tpu.memory_space<vmem>>, %arg3: memref<128x128xbf16, #tpu.memory_space<vmem>>, %arg4: memref<1x128xf32, #tpu.memory_space<vmem>>, %arg5: memref<64x128xbf16, #tpu.memory_space<vmem>>, %arg6: memref<64x128xf32, #tpu.memory_space<vmem>>) attributes {dimension_semantics = [#tpu.dimension_semantics<parallel>, #tpu.dimension_semantics<arbitrary>], iteration_bounds = array<i64: 2, 1>, scalar_prefetch = 0 : i64, scratch_operands = 1 : i64, tpu.core_type = #tpu.core_type<tc>, window_params = [{transform_indices = @transform_0, window_bounds = array<i64: 64, 128>}, {pipeline_mode = #tpu.pipeline_mode<synchronous>, transform_indices = @transform_1, window_bounds = array<i64: 128, 128>}, {pipeline_mode = #tpu.pipeline_mode<synchronous>, transform_indices = @transform_2, window_bounds = array<i64: 1, 128>}, {transform_indices = @transform_3, window_bounds = array<i64: 64, 128>}]} {
    %c0_i32 = arith.constant 0 : i32
    %0 = arith.cmpi eq, %arg1, %c0_i32 : i32
    %1 = arith.extui %0 : i1 to i32
    %c0_i32_0 = arith.constant 0 : i32
    %2 = arith.cmpi ne, %1, %c0_i32_0 : i32
    scf.if %2 {
      %cst_9 = arith.constant 0.000000e+00 : f32
      %15 = vector.broadcast %cst_9 : f32 to vector<64x128xf32>
      %c0_10 = arith.constant 0 : index
      %c0_11 = arith.constant 0 : index
      %16 = vector.load %arg6[%c0_10, %c0_11] : memref<64x128xf32, #tpu.memory_space<vmem>>, vector<64x128xf32>
      tpu.vector_store %arg6[%c0_10, %c0_11], %15 {strides = array<i32>} : memref<64x128xf32, #tpu.memory_space<vmem>>, vector<64x128xf32>,
    } else {
    }
    %c128_i32 = arith.constant 128 : i32
    %3 = arith.muli %arg1, %c128_i32 : i32
    %4 = tpu.assume_multiple %3, 128 : i32
    %5 = arith.index_cast %4 : i32 to index
    %c0 = arith.constant 0 : index
    %6 = vector.load %arg3[%5, %c0] : memref<128x128xbf16, #tpu.memory_space<vmem>>, vector<128x128xbf16>
    %c0_1 = arith.constant 0 : index
    %c0_2 = arith.constant 0 : index
    %7 = vector.load %arg6[%c0_1, %c0_2] : memref<64x128xf32, #tpu.memory_space<vmem>>, vector<64x128xf32>
    %c0_3 = arith.constant 0 : index
    %c0_4 = arith.constant 0 : index
    %8 = vector.load %arg2[%c0_3, %c0_4] : memref<64x128xbf16, #tpu.memory_space<vmem>>, vector<64x128xbf16>
    %cst = arith.constant dense<0.000000e+00> : vector<64x128xf32>
    %9 = tpu.matmul %8, %6, %cst {dimension_numbers = #tpu.dot_dimension_numbers<[1], [0], [0], [1], [0, 0, 1, 1], [], []>} : vector<64x128xbf16>, vector<128x128xbf16>, vector<64x128xf32> -> vector<64x128xf32>
    %10 = arith.addf %7, %9 : vector<64x128xf32>
    %c0_5 = arith.constant 0 : index
    %c0_6 = arith.constant 0 : index
    %11 = vector.load %arg6[%c0_5, %c0_6] : memref<64x128xf32, #tpu.memory_space<vmem>>, vector<64x128xf32>
    tpu.vector_store %arg6[%c0_5, %c0_6], %10 {strides = array<i32>} : memref<64x128xf32, #tpu.memory_space<vmem>>, vector<64x128xf32>,
    %c0_i32_7 = arith.constant 0 : i32
    %12 = arith.cmpi eq, %arg1, %c0_i32_7 : i32
    %13 = arith.extui %12 : i1 to i32
    %c0_i32_8 = arith.constant 0 : i32
    %14 = arith.cmpi ne, %13, %c0_i32_8 : i32
    scf.if %14 {
      %c0_9 = arith.constant 0 : index
      %c0_10 = arith.constant 0 : index
      %15 = vector.load %arg6[%c0_9, %c0_10] : memref<64x128xf32, #tpu.memory_space<vmem>>, vector<64x128xf32>
      %c0_11 = arith.constant 0 : index
      %c0_12 = arith.constant 0 : index
      %16 = vector.load %arg4[%c0_11, %c0_12] : memref<1x128xf32, #tpu.memory_space<vmem>>, vector<1x128xf32>
      %17 = vector.broadcast %16 : vector<1x128xf32> to vector<64x128xf32>
      %18 = arith.addf %15, %17 : vector<64x128xf32>
      %cst_13 = arith.constant 0.000000e+00 : f32
      %19 = vector.broadcast %cst_13 : f32 to vector<64x128xf32>
      %20 = arith.maximumf %18, %19 : vector<64x128xf32>
      %21 = arith.truncf %20 : vector<64x128xf32> to vector<64x128xbf16>
      %c0_14 = arith.constant 0 : index
      %c0_15 = arith.constant 0 : index
      %22 = vector.load %arg5[%c0_14, %c0_15] : memref<64x128xbf16, #tpu.memory_space<vmem>>, vector<64x128xbf16>
      tpu.vector_store %arg5[%c0_14, %c0_15], %21 {strides = array<i32>} : memref<64x128xbf16, #tpu.memory_space<vmem>>, vector<64x128xbf16>,
    } else {
    }
    return
  }
  func.func @transform_0(%arg0: i32, %arg1: i32) -> (i32, i32) {
    %c0_i32 = arith.constant 0 : i32
    return %arg0, %arg1 : i32, i32
  }
  func.func @transform_1(%arg0: i32, %arg1: i32) -> (i32, i32) {
    %c0_i32 = arith.constant 0 : i32
    %c0_i32_0 = arith.constant 0 : i32
    %c0_i32_1 = arith.constant 0 : i32
    return %c0_i32, %c0_i32_0 : i32, i32
  }
  func.func @transform_2(%arg0: i32, %arg1: i32) -> (i32, i32) {
    %c0_i32 = arith.constant 0 : i32
    %c0_i32_0 = arith.constant 0 : i32
    %c0_i32_1 = arith.constant 0 : i32
    return %c0_i32, %c0_i32_0 : i32, i32
  }
  func.func @transform_3(%arg0: i32, %arg1: i32) -> (i32, i32) {
    %c0_i32 = arith.constant 0 : i32
    %c0_i32_0 = arith.constant 0 : i32
    return %arg0, %c0_i32 : i32, i32
  }
}

module attributes {stable_mosaic.version = 11 : i64} {
  func.func @gcn_agg_kernel(%arg0: i32, %arg1: i32, %arg2: memref<64x128xbf16, #tpu.memory_space<vmem>>, %arg3: memref<128x128xbf16, #tpu.memory_space<vmem>>, %arg4: memref<1x128xf32, #tpu.memory_space<vmem>>, %arg5: memref<64x128xf32, #tpu.memory_space<vmem>>, %arg6: memref<64x128xf32, #tpu.memory_space<vmem>>) attributes {dimension_semantics = [#tpu.dimension_semantics<parallel>, #tpu.dimension_semantics<arbitrary>], iteration_bounds = array<i64: 2, 1>, scalar_prefetch = 0 : i64, scratch_operands = 1 : i64, tpu.core_type = #tpu.core_type<tc>, window_params = [{transform_indices = @transform_0, window_bounds = array<i64: 64, 128>}, {pipeline_mode = #tpu.pipeline_mode<synchronous>, transform_indices = @transform_1, window_bounds = array<i64: 128, 128>}, {pipeline_mode = #tpu.pipeline_mode<synchronous>, transform_indices = @transform_2, window_bounds = array<i64: 1, 128>}, {transform_indices = @transform_3, window_bounds = array<i64: 64, 128>}]} {
    %c0_i32 = arith.constant 0 : i32
    %0 = arith.cmpi eq, %arg1, %c0_i32 : i32
    %1 = arith.extui %0 : i1 to i32
    %c0_i32_0 = arith.constant 0 : i32
    %2 = arith.cmpi ne, %1, %c0_i32_0 : i32
    scf.if %2 {
      %cst_9 = arith.constant 0.000000e+00 : f32
      %15 = vector.broadcast %cst_9 : f32 to vector<64x128xf32>
      %c0_10 = arith.constant 0 : index
      %c0_11 = arith.constant 0 : index
      %16 = vector.load %arg6[%c0_10, %c0_11] : memref<64x128xf32, #tpu.memory_space<vmem>>, vector<64x128xf32>
      tpu.vector_store %arg6[%c0_10, %c0_11], %15 {strides = array<i32>} : memref<64x128xf32, #tpu.memory_space<vmem>>, vector<64x128xf32>,
    } else {
    }
    %c128_i32 = arith.constant 128 : i32
    %3 = arith.muli %arg1, %c128_i32 : i32
    %4 = tpu.assume_multiple %3, 128 : i32
    %5 = arith.index_cast %4 : i32 to index
    %c0 = arith.constant 0 : index
    %6 = vector.load %arg3[%5, %c0] : memref<128x128xbf16, #tpu.memory_space<vmem>>, vector<128x128xbf16>
    %c0_1 = arith.constant 0 : index
    %c0_2 = arith.constant 0 : index
    %7 = vector.load %arg6[%c0_1, %c0_2] : memref<64x128xf32, #tpu.memory_space<vmem>>, vector<64x128xf32>
    %c0_3 = arith.constant 0 : index
    %c0_4 = arith.constant 0 : index
    %8 = vector.load %arg2[%c0_3, %c0_4] : memref<64x128xbf16, #tpu.memory_space<vmem>>, vector<64x128xbf16>
    %cst = arith.constant dense<0.000000e+00> : vector<64x128xf32>
    %9 = tpu.matmul %8, %6, %cst {dimension_numbers = #tpu.dot_dimension_numbers<[1], [0], [0], [1], [0, 0, 1, 1], [], []>} : vector<64x128xbf16>, vector<128x128xbf16>, vector<64x128xf32> -> vector<64x128xf32>
    %10 = arith.addf %7, %9 : vector<64x128xf32>
    %c0_5 = arith.constant 0 : index
    %c0_6 = arith.constant 0 : index
    %11 = vector.load %arg6[%c0_5, %c0_6] : memref<64x128xf32, #tpu.memory_space<vmem>>, vector<64x128xf32>
    tpu.vector_store %arg6[%c0_5, %c0_6], %10 {strides = array<i32>} : memref<64x128xf32, #tpu.memory_space<vmem>>, vector<64x128xf32>,
    %c0_i32_7 = arith.constant 0 : i32
    %12 = arith.cmpi eq, %arg1, %c0_i32_7 : i32
    %13 = arith.extui %12 : i1 to i32
    %c0_i32_8 = arith.constant 0 : i32
    %14 = arith.cmpi ne, %13, %c0_i32_8 : i32
    scf.if %14 {
      %c0_9 = arith.constant 0 : index
      %c0_10 = arith.constant 0 : index
      %15 = vector.load %arg6[%c0_9, %c0_10] : memref<64x128xf32, #tpu.memory_space<vmem>>, vector<64x128xf32>
      %c0_11 = arith.constant 0 : index
      %c0_12 = arith.constant 0 : index
      %16 = vector.load %arg4[%c0_11, %c0_12] : memref<1x128xf32, #tpu.memory_space<vmem>>, vector<1x128xf32>
      %17 = vector.broadcast %16 : vector<1x128xf32> to vector<64x128xf32>
      %18 = arith.addf %15, %17 : vector<64x128xf32>
      %c0_13 = arith.constant 0 : index
      %c0_14 = arith.constant 0 : index
      %19 = vector.load %arg5[%c0_13, %c0_14] : memref<64x128xf32, #tpu.memory_space<vmem>>, vector<64x128xf32>
      tpu.vector_store %arg5[%c0_13, %c0_14], %18 {strides = array<i32>} : memref<64x128xf32, #tpu.memory_space<vmem>>, vector<64x128xf32>,
    } else {
    }
    return
  }
  func.func @transform_0(%arg0: i32, %arg1: i32) -> (i32, i32) {
    %c0_i32 = arith.constant 0 : i32
    return %arg0, %arg1 : i32, i32
  }
  func.func @transform_1(%arg0: i32, %arg1: i32) -> (i32, i32) {
    %c0_i32 = arith.constant 0 : i32
    %c0_i32_0 = arith.constant 0 : i32
    %c0_i32_1 = arith.constant 0 : i32
    return %c0_i32, %c0_i32_0 : i32, i32
  }
  func.func @transform_2(%arg0: i32, %arg1: i32) -> (i32, i32) {
    %c0_i32 = arith.constant 0 : i32
    %c0_i32_0 = arith.constant 0 : i32
    %c0_i32_1 = arith.constant 0 : i32
    return %c0_i32, %c0_i32_0 : i32, i32
  }
  func.func @transform_3(%arg0: i32, %arg1: i32) -> (i32, i32) {
    %c0_i32 = arith.constant 0 : i32
    %c0_i32_0 = arith.constant 0 : i32
    return %arg0, %c0_i32 : i32, i32
  }
}

</mosaic_0001>

<bundles_post_ra>
// kernel: _forward.3
= control target key start
LH: loop header
LB: loop body
LE: loop exit
PB: predicated region body
PF: predicated region fallthrough
CT: control target
= control target key end

     0   :  { %s660_s12 = smov 0   ;;  %s662_s13 = smov 0   ;;  %s730_s0 = inlined_call_operand.vmem [shape: bf16[128,128], index: 0, kind: input, shape index: {}]   ;;  %s731_s1 = inlined_call_operand.vmem [shape: bf16[128,128], index: 1, kind: input, shape index: {}]   ;;  %s732_s2 = inlined_call_operand.vmem [shape: f32[1,128], index: 2, kind: input, shape index: {}]   ;;  %s733_s3 = inlined_call_operand.vmem [shape: f32[128,128], index: 3, kind: output, shape index: {}]  }
   0x1   :  { %s664_s14 = smov 0  }
   0x2 LB: > { %s25_s15 = sadd.s32 1, %s634_s13  ;;  %p508_p0 = scmp.ge.s32.totalorder %s638_s14, 1  ;;  %s638_s14 = sphi %s664_s14, %s13_s14   ;;  %s634_s13 = sphi %s662_s13, %s735_s13   ;;  %s630_s12 = sphi %s660_s12, %s734_s12  }
   0x3   : > { %p27_p1 = scmp.ge.s32.totalorder %s25_s15, 2  ;;  %p155_p2 = scmp.lt.s32.totalorder %s638_s14, 3 }
   0x5   : > { %s737_s15 = smov (%p27_p1, %s25_s15), 0  ;;  %p156_p3 = pnand %p508_p0, %p155_p2 }
   0x6   : > { %s509_s18 = sshll.u32 (!%p156_p3), %s630_s12, 3 }
   0x7   : > { %159 = sbr.rel (%p156_p3) target bundleno = 247 (0xf7), region = 32  ;;  %p183_p4 = scmp.lt.s32.totalorder (!%p156_p3), %s509_s18, 15 }
   0xc   : > { %v604_v0 = vld [vmem:[%s731_s1 + $0x38] sm:$0xff]   ;;  %v605_v1 = vld [vmem:[%s731_s1 + $0x30] sm:$0xff]   ;;  %s739_s18 = smov (!%p183_p4, %s509_s18), 15  ;;  %v606_v2 = vld [vmem:[%s731_s1 + $0x28] sm:$0xff]  }
   0xd   : > { %540 = vmatprep.subr.bf16.mxu0 %v604_v0  ;;  %564 = vmatprep.subr.bf16.mxu1 %v604_v0  ;;  %s510_s23 = sshll.u32 %s739_s18, 2  ;;  %v607_v3 = vld [vmem:[%s731_s1 + $0x20] sm:$0xff]   ;;  %v608_v6 = vld [vmem:[%s731_s1 + $0x18] sm:$0xff]   ;;  %v609_v7 = vld [vmem:[%s731_s1 + $0x10] sm:$0xff]   ;;  %s512_s10 = sshll.u32 %s739_s18, 3 }
   0xe   : > { %541 = vmatpush3.bf16.msra.mxu0 %v604_v0  ;;  %572 = vmatpush3.bf16.msra.mxu1 %v604_v0  ;;  %s693_s26 = scalar_lea.vmem %s730_s0, %s510_s23  ;;  %v610_v8 = vld [vmem:[%s731_s1 + $0x8] sm:$0xff]   ;;  %v611_v9 = vld [vmem:[%s731_s1] sm:$0xff]   ;;  %s195_s19 = scalar_lea.vmem %s733_s3, %s512_s10 }
   0xf   : > { %542 = vmatprep.subr.bf16.mxu0 %v605_v1  ;;  %565 = vmatprep.subr.bf16.mxu1 %v605_v1  ;;  %v612_v4 = vld [vmem:[%s693_s26] sm:$0xff]   ;;  %v613_v5 = vld [vmem:[%s693_s26 + $0x10] sm:$0xff]   ;;  %v614_v10 = vld [vmem:[%s693_s26 + $0x8] sm:$0xff]  }
  0x10   : > { %556 = vmatprep.mubr.bf16.mxu0 %v612_v4  ;;  %560 = vmatprep.mubr.bf16.mxu1 %v613_v5  ;;  %v615_v11 = vld [vmem:[%s693_s26 + $0x18] sm:$0xff]   ;;  %v525_v12 = vld [vmem:[%s732_s2] ss:$0 sm:$0xff] }
  0x12   : > { %543 = vmatpush3.bf16.msra.mxu0 %v605_v1  ;;  %573 = vmatpush3.bf16.msra.mxu1 %v605_v1 }
  0x13   : > { %544 = vmatprep.subr.bf16.mxu0 %v606_v2  ;;  %566 = vmatprep.subr.bf16.mxu1 %v606_v2 }
  0x16   : > { %545 = vmatpush3.bf16.msra.mxu0 %v606_v2  ;;  %574 = vmatpush3.bf16.msra.mxu1 %v606_v2 }
  0x17   : > { %546 = vmatprep.subr.bf16.mxu0 %v607_v3  ;;  %567 = vmatprep.subr.bf16.mxu1 %v607_v3 }
  0x1a   : > { %547 = vmatpush3.bf16.msra.mxu0 %v607_v3  ;;  %575 = vmatpush3.bf16.msra.mxu1 %v607_v3 }
  0x1b   : > { %548 = vmatprep.subr.bf16.mxu0 %v608_v6  ;;  %568 = vmatprep.subr.bf16.mxu1 %v608_v6 }
  0x1e   : > { %549 = vmatpush3.bf16.msra.mxu0 %v608_v6  ;;  %576 = vmatpush3.bf16.msra.mxu1 %v608_v6 }
  0x1f   : > { %550 = vmatprep.subr.bf16.mxu0 %v609_v7  ;;  %569 = vmatprep.subr.bf16.mxu1 %v609_v7 }
  0x22   : > { %551 = vmatpush3.bf16.msra.mxu0 %v609_v7  ;;  %577 = vmatpush3.bf16.msra.mxu1 %v609_v7 }
  0x23   : > { %552 = vmatprep.subr.bf16.mxu0 %v610_v8  ;;  %570 = vmatprep.subr.bf16.mxu1 %v610_v8 }
  0x26   : > { %553 = vmatpush3.bf16.msra.mxu0 %v610_v8  ;;  %578 = vmatpush3.bf16.msra.mxu1 %v610_v8 }
  0x27   : > { %554 = vmatprep.subr.bf16.mxu0 %v611_v9  ;;  %571 = vmatprep.subr.bf16.mxu1 %v611_v9 }
  0x2a   : > { %555 = vmatpush3.bf16.msra.mxu0 %v611_v9  ;;  %579 = vmatpush3.bf16.msra.mxu1 %v611_v9 }
  0x2d   : > { %557 = vmatmul.mubr.bf16.vlgmr.msra.gmra.mxu0 %v614_v10  ;;  %561 = vmatmul.mubr.bf16.vlgmr.msra.gmra.mxu1 %v615_v11 }
  0xed   : > { %v558_v13 = vpop.f32.mrf.mxu0  ;;  %v562_v14 = vpop.f32.mrf.mxu1 }
  0xee   : > { %v420_v15 = vadd.f32 %v558_v13, %v525_v12  ;;  %v424_v16 = vadd.f32 %v562_v14, %v525_v12 }
  0xef   : > { %v353_v17 = vpop.f32.mrf.mxu0  ;;  %v369_v18 = vpop.f32.mrf.mxu1 }
  0xf0   : > { %428 = vst [vmem:[%s195_s19 + $0x10] sm:$0xff] %v420_v15  ;;  %432 = vst [vmem:[%s195_s19 + $0x30] sm:$0xff] %v424_v16  ;;  %v418_v19 = vadd.f32 %v525_v12, %v353_v17  ;;  %v422_v20 = vadd.f32 %v525_v12, %v369_v18 }
  0xf1   : > { %v559_v21 = vpop.f32.mrf.mxu0  ;;  %v563_v22 = vpop.f32.mrf.mxu1 }
  0xf2   : > { %426 = vst [vmem:[%s195_s19] sm:$0xff] %v418_v19  ;;  %430 = vst [vmem:[%s195_s19 + $0x20] sm:$0xff] %v422_v20  ;;  %v421_v23 = vadd.f32 %v559_v21, %v525_v12  ;;  %v425_v24 = vadd.f32 %v563_v22, %v525_v12 }
  0xf3   : > { %v356_v25 = vpop.f32.mrf.mxu0  ;;  %v372_v26 = vpop.f32.mrf.mxu1 }
  0xf4   : > { %429 = vst [vmem:[%s195_s19 + $0x18] sm:$0xff] %v421_v23  ;;  %433 = vst [vmem:[%s195_s19 + $0x38] sm:$0xff] %v425_v24  ;;  %v419_v27 = vadd.f32 %v525_v12, %v356_v25  ;;  %v423_v28 = vadd.f32 %v525_v12, %v372_v26 }
  0xf6   : > { %427 = vst [vmem:[%s195_s19 + $0x8] sm:$0xff] %v419_v27  ;;  %431 = vst [vmem:[%s195_s19 + $0x28] sm:$0xff] %v423_v28 }
  0xf7 PF: > { %s13_s14 = sadd.s32 1, %s638_s14   ;;  %s734_s12 = smov %s634_s13 }
  0xf8   : > { %p10_p5 = scmp.ge.s32.totalorder %s13_s14, 4   ;;  %s735_s13 = smov %s737_s15 }
  0xfa   :  { %12 = sbr.rel (!%p10_p5) target bundleno = 2 (0x2), region = 71 }

// kernel: _forward.2
= control target key start
LH: loop header
LB: loop body
LE: loop exit
PB: predicated region body
PF: predicated region fallthrough
CT: control target
= control target key end

     0   :  { %s739_s12 = smov 0   ;;  %s741_s13 = smov 0   ;;  %s812_s0 = inlined_call_operand.vmem [shape: bf16[128,128], index: 0, kind: input, shape index: {}]   ;;  %s813_s1 = inlined_call_operand.vmem [shape: bf16[128,128], index: 1, kind: input, shape index: {}]   ;;  %s814_s2 = inlined_call_operand.vmem [shape: f32[1,128], index: 2, kind: input, shape index: {}]   ;;  %s815_s3 = inlined_call_operand.vmem [shape: bf16[128,128], index: 3, kind: output, shape index: {}]  }
   0x1   :  { %s743_s14 = smov 0  }
   0x2 LB: > { %s25_s15 = sadd.s32 1, %s713_s13  ;;  %p548_p0 = scmp.ge.s32.totalorder %s717_s14, 1  ;;  %s717_s14 = sphi %s743_s14, %s13_s14   ;;  %s713_s13 = sphi %s741_s13, %s817_s13   ;;  %s709_s12 = sphi %s739_s12, %s816_s12  }
   0x3   : > { %p27_p1 = scmp.ge.s32.totalorder %s25_s15, 2  ;;  %p155_p2 = scmp.lt.s32.totalorder %s717_s14, 3 }
   0x5   : > { %s819_s15 = smov (%p27_p1, %s25_s15), 0  ;;  %p156_p3 = pnand %p548_p0, %p155_p2 }
   0x6   : > { %s549_s18 = sshll.u32 (!%p156_p3), %s709_s12, 3 }
   0x7   : > { %159 = sbr.rel (%p156_p3) target bundleno = 251 (0xfb), region = 32  ;;  %p183_p4 = scmp.lt.s32.totalorder (!%p156_p3), %s549_s18, 15 }
   0xc   : > { %v683_v0 = vld [vmem:[%s813_s1 + $0x38] sm:$0xff]   ;;  %v684_v1 = vld [vmem:[%s813_s1 + $0x30] sm:$0xff]   ;;  %s821_s18 = smov (!%p183_p4, %s549_s18), 15  ;;  %v685_v2 = vld [vmem:[%s813_s1 + $0x28] sm:$0xff]  }
   0xd   : > { %619 = vmatprep.subr.bf16.mxu0 %v683_v0  ;;  %643 = vmatprep.subr.bf16.mxu1 %v683_v0  ;;  %s550_s23 = sshll.u32 %s821_s18, 2  ;;  %v686_v3 = vld [vmem:[%s813_s1 + $0x20] sm:$0xff]   ;;  %v687_v6 = vld [vmem:[%s813_s1 + $0x18] sm:$0xff]   ;;  %v688_v7 = vld [vmem:[%s813_s1 + $0x10] sm:$0xff]  }
   0xe   : > { %620 = vmatpush3.bf16.msra.mxu0 %v683_v0  ;;  %651 = vmatpush3.bf16.msra.mxu1 %v683_v0  ;;  %s774_s26 = scalar_lea.vmem %s812_s0, %s550_s23  ;;  %v689_v8 = vld [vmem:[%s813_s1 + $0x8] sm:$0xff]   ;;  %v690_v9 = vld [vmem:[%s813_s1] sm:$0xff]   ;;  %s195_s17 = scalar_lea.vmem %s815_s3, %s550_s23 }
   0xf   : > { %621 = vmatprep.subr.bf16.mxu0 %v684_v1  ;;  %644 = vmatprep.subr.bf16.mxu1 %v684_v1  ;;  %v691_v4 = vld [vmem:[%s774_s26] sm:$0xff]   ;;  %v692_v5 = vld [vmem:[%s774_s26 + $0x10] sm:$0xff]   ;;  %v693_v10 = vld [vmem:[%s774_s26 + $0x8] sm:$0xff]  }
  0x10   : > { %635 = vmatprep.mubr.bf16.mxu0 %v691_v4  ;;  %639 = vmatprep.mubr.bf16.mxu1 %v692_v5  ;;  %v694_v11 = vld [vmem:[%s774_s26 + $0x18] sm:$0xff]   ;;  %v565_v12 = vld [vmem:[%s814_s2] ss:$0 sm:$0xff] }
  0x12   : > { %622 = vmatpush3.bf16.msra.mxu0 %v684_v1  ;;  %652 = vmatpush3.bf16.msra.mxu1 %v684_v1 }
  0x13   : > { %623 = vmatprep.subr.bf16.mxu0 %v685_v2  ;;  %645 = vmatprep.subr.bf16.mxu1 %v685_v2 }
  0x16   : > { %624 = vmatpush3.bf16.msra.mxu0 %v685_v2  ;;  %653 = vmatpush3.bf16.msra.mxu1 %v685_v2 }
  0x17   : > { %625 = vmatprep.subr.bf16.mxu0 %v686_v3  ;;  %646 = vmatprep.subr.bf16.mxu1 %v686_v3 }
  0x1a   : > { %626 = vmatpush3.bf16.msra.mxu0 %v686_v3  ;;  %654 = vmatpush3.bf16.msra.mxu1 %v686_v3 }
  0x1b   : > { %627 = vmatprep.subr.bf16.mxu0 %v687_v6  ;;  %647 = vmatprep.subr.bf16.mxu1 %v687_v6 }
  0x1e   : > { %628 = vmatpush3.bf16.msra.mxu0 %v687_v6  ;;  %655 = vmatpush3.bf16.msra.mxu1 %v687_v6 }
  0x1f   : > { %629 = vmatprep.subr.bf16.mxu0 %v688_v7  ;;  %648 = vmatprep.subr.bf16.mxu1 %v688_v7 }
  0x22   : > { %630 = vmatpush3.bf16.msra.mxu0 %v688_v7  ;;  %656 = vmatpush3.bf16.msra.mxu1 %v688_v7 }
  0x23   : > { %631 = vmatprep.subr.bf16.mxu0 %v689_v8  ;;  %649 = vmatprep.subr.bf16.mxu1 %v689_v8 }
  0x26   : > { %632 = vmatpush3.bf16.msra.mxu0 %v689_v8  ;;  %657 = vmatpush3.bf16.msra.mxu1 %v689_v8 }
  0x27   : > { %633 = vmatprep.subr.bf16.mxu0 %v690_v9  ;;  %650 = vmatprep.subr.bf16.mxu1 %v690_v9 }
  0x2a   : > { %634 = vmatpush3.bf16.msra.mxu0 %v690_v9  ;;  %658 = vmatpush3.bf16.msra.mxu1 %v690_v9 }
  0x2d   : > { %636 = vmatmul.mubr.bf16.vlgmr.msra.gmra.mxu0 %v693_v10  ;;  %640 = vmatmul.mubr.bf16.vlgmr.msra.gmra.mxu1 %v694_v11 }
  0xed   : > { %v637_v13 = vpop.f32.mrf.mxu0  ;;  %v641_v14 = vpop.f32.mrf.mxu1 }
  0xee   : > { %v420_v15 = vadd.f32 %v637_v13, %v565_v12  ;;  %v424_v16 = vadd.f32 %v641_v14, %v565_v12 }
  0xef   : > { %v353_v17 = vpop.f32.mrf.mxu0  ;;  %v369_v18 = vpop.f32.mrf.mxu1 }
  0xf0   : > { %v418_v19 = vadd.f32 %v565_v12, %v353_v17  ;;  %v422_v20 = vadd.f32 %v565_v12, %v369_v18  ;;  %v428_v25 = vmax.f32 %v420_v15, 0.0  ;;  %v432_v26 = vmax.f32 %v424_v16, 0.0 }
  0xf1   : > { %v638_v21 = vpop.f32.mrf.mxu0  ;;  %v642_v22 = vpop.f32.mrf.mxu1 }
  0xf2   : > { %v421_v23 = vadd.f32 %v638_v21, %v565_v12  ;;  %v425_v24 = vadd.f32 %v642_v22, %v565_v12  ;;  %v426_v33 = vmax.f32 %v418_v19, 0.0  ;;  %v430_v34 = vmax.f32 %v422_v20, 0.0 }
  0xf3   : > { %v356_v27 = vpop.f32.mrf.mxu0  ;;  %v372_v28 = vpop.f32.mrf.mxu1 }
  0xf4   : > { %v429_v29 = vmax.f32 %v421_v23, 0.0  ;;  %v433_v30 = vmax.f32 %v425_v24, 0.0  ;;  %v419_v31 = vadd.f32 %v565_v12, %v356_v27  ;;  %v423_v32 = vadd.f32 %v565_v12, %v372_v28 }
  0xf6   : > { %v592_v35 = vpack.c.bf16 %v429_v29, %v428_v25  ;;  %v602_v36 = vpack.c.bf16 %v433_v30, %v432_v26  ;;  %v427_v37 = vmax.f32 %v419_v31, 0.0  ;;  %v431_v38 = vmax.f32 %v423_v32, 0.0 }
  0xf8   : > { %604 = vst [vmem:[%s195_s17 + $0x8] sm:$0xff] %v592_v35   ;;  %606 = vst [vmem:[%s195_s17 + $0x18] sm:$0xff] %v602_v36   ;;  %v587_v39 = vpack.c.bf16 %v427_v37, %v426_v33  ;;  %v597_v40 = vpack.c.bf16 %v431_v38, %v430_v34 }
  0xfa   : > { %588 = vst [vmem:[%s195_s17] sm:$0xff] %v587_v39   ;;  %605 = vst [vmem:[%s195_s17 + $0x10] sm:$0xff] %v597_v40  }
  0xfb PF: > { %s13_s14 = sadd.s32 1, %s717_s14   ;;  %s816_s12 = smov %s713_s13 }
  0xfc   : > { %p10_p5 = scmp.ge.s32.totalorder %s13_s14, 4   ;;  %s817_s13 = smov %s819_s15 }
  0xfe   :  { %12 = sbr.rel (!%p10_p5) target bundleno = 2 (0x2), region = 71 }

</bundles_post_ra>
